<compile_context>
chip_gen: v6e
topology: v6e:2x2x1
jax: 0.10.0
libtpu: 0.0.40
codegen_flags: <defaults>
</compile_context>

<pallas_src>
import functools

import jax
import jax.numpy as jnp
from jax import lax
from jax.experimental import pallas as pl
from jax.experimental.pallas import tpu as pltpu


def _focal_kernel(logits_ref, target_ref, weights_ref, loss_ref, *,
                  alpha, gamma, eps, valid_a, tile_a, fused_log):
    # logits_ref / target_ref: (B, C, TA); weights_ref / loss_ref: (B, 1, TA)
    x = logits_ref[...].astype(jnp.float32)
    t = target_ref[...].astype(jnp.float32)
    w = weights_ref[...].astype(jnp.float32)

    if valid_a is not None:
        # Partial edge block: zero out-of-range anchor lanes so exp/log stay finite.
        # (Lanes past `valid_a` are discarded by the masked output writeback anyway.)
        a0 = pl.program_id(0) * tile_a
        lane = lax.broadcasted_iota(jnp.int32, x.shape, dimension=2)
        in_range = (a0 + lane) < valid_a
        x = jnp.where(in_range, x, 0.0)
        t = jnp.where(in_range, t, 0.0)

    # Stable softmax over the class (sublane) axis; everything is per-lane.
    m = jnp.max(x, axis=1, keepdims=True)            # (B, 1, TA)
    e = jnp.exp(x - m)                               # (B, C, TA)
    s = jnp.sum(e, axis=1, keepdims=True)            # (B, 1, TA)
    inv_s = 1.0 / s                                  # one divide per anchor (not per class)
    p = e * inv_s + eps                              # softmax + eps (matches torch forward)

    om = 1.0 - p
    if float(gamma) == 2.0:
        mod = om * om                                # no pow for the default gamma
    else:
        mod = jnp.power(om, gamma)

    if fused_log:
        # One log per anchor instead of C logs of p. Drops the +eps inside the log:
        # only deviates where softmax(p) is very small. Useful when EUP-bound (v7x, bf16).
        log_p = (x - m) - jnp.log(s)
    else:
        log_p = jnp.log(p)                           # exact torch semantics

    focal = (-alpha) * mod * log_p                   # (B, C, TA)
    loss = jnp.sum(t * focal, axis=1, keepdims=True)  # (B, 1, TA)
    loss_ref[...] = (loss * w).astype(loss_ref.dtype)


def softmax_focal_classification_loss(logits, target, weights,
                                      alpha=1.0, gamma=2.0, eps=1e-6,
                                      anchor_tile=None, fused_log=False):
    """Forward of btcdet SoftmaxFocalClassificationLoss.

    logits:  (B, C, A) float32/bf16 — class axis on dim 1 (PyTorch layout).
    target:  (B, C, A) one-hot (or soft) targets along the class axis.
    weights: (B, A) or (B, 1, A).
    Returns: (B, 1, A) float32 = sum(target * focal, dim=1, keepdims=True) * weights.
    """
    B, C, A = logits.shape
    weights3 = weights.reshape(B, 1, A).astype(jnp.float32)

    in_itemsize = max(jnp.dtype(logits.dtype).itemsize,
                      jnp.dtype(target.dtype).itemsize)

    # --- Anchor-tile sizing from a per-TC VMEM budget (conservative for v7x 64 MiB/TC).
    if anchor_tile is None:
        # Per anchor-lane bytes: 2 double-buffered (B,C) input streams + weights/output
        # double buffers + ~6 f32 (B,C) elementwise temporaries in the body.
        per_anchor = B * (2 * 2 * C * in_itemsize + 2 * 2 * 4 + 6 * C * 4)
        budget = 24 << 20
        ta = budget // max(per_anchor, 1)
        anchor_tile = max(128, min(32768, (ta // 128) * 128))

    if A <= anchor_tile:
        TA = A                                   # full extent: no 128-divisibility needed
    else:
        TA = max(128, (int(anchor_tile) // 128) * 128)

    num_tiles = -(-A // TA)                      # cdiv; no wrapper-side padding
    has_tail = (A % TA) != 0

    kernel = functools.partial(
        _focal_kernel,
        alpha=float(alpha), gamma=float(gamma), eps=float(eps),
        valid_a=(A if has_tail else None), tile_a=int(TA),
        fused_log=bool(fused_log))

    # Raise the scoped-VMEM limit for large tiles (defaults: 16 MiB v5e / 32 MiB v6e,v7x),
    # but stay below v7x's 64 MiB physical per TC.
    block_bytes = B * TA * (2 * C * in_itemsize + 2 * 4)
    vmem_limit = int(min(max(4 * block_bytes + (8 << 20), 16 << 20), 64 << 20))

    cost = pl.CostEstimate(
        flops=10 * B * C * A,
        transcendentals=2 * B * C * A,
        bytes_accessed=2 * B * C * A * in_itemsize + 2 * B * A * 4,
    )

    return pl.pallas_call(
        kernel,
        out_shape=jax.ShapeDtypeStruct((B, 1, A), jnp.float32),
        grid_spec=pltpu.PrefetchScalarGridSpec(
            num_scalar_prefetch=0,
            grid=(num_tiles,),
            in_specs=[
                pl.BlockSpec((B, C, TA), lambda a: (0, 0, a)),
                pl.BlockSpec((B, C, TA), lambda a: (0, 0, a)),
                pl.BlockSpec((B, 1, TA), lambda a: (0, 0, a)),
            ],
            out_specs=pl.BlockSpec((B, 1, TA), lambda a: (0, 0, a)),
        ),
        compiler_params=pltpu.CompilerParams(
            dimension_semantics=("parallel",),
            vmem_limit_bytes=vmem_limit),
        cost_estimate=cost,
    )(logits, target, weights3)


def _reference(logits, target, weights, alpha=1.0, gamma=2.0, eps=1e-6):
    # Pure-JAX replica of the PyTorch forward.
    B, C, A = logits.shape
    p = jax.nn.softmax(logits.astype(jnp.float32), axis=1) + eps
    focal = -alpha * jnp.power(1.0 - p, gamma) * jnp.log(p)
    loss = jnp.sum(target.astype(jnp.float32) * focal, axis=1, keepdims=True)
    return loss * weights.reshape(B, 1, A).astype(jnp.float32)


if __name__ == "__main__":
    key = jax.random.PRNGKey(0)

    # --- Test 1: small shapes, single full-extent tile.
    B, C, A = 2, 8, 16
    k1, k2, k3, key = *jax.random.split(key, 3), jax.random.split(key, 4)[3]
    logits = jax.random.normal(k1, (B, C, A), dtype=jnp.float32)
    cls_idx = jax.random.randint(k2, (B, A), 0, C)
    target = jnp.transpose(jax.nn.one_hot(cls_idx, C, dtype=jnp.float32), (0, 2, 1))
    weights = jax.random.uniform(k3, (B, A), dtype=jnp.float32)

    loss = softmax_focal_classification_loss(logits, target, weights,
                                             alpha=1.0, gamma=2.0, eps=1e-6)
    jax.block_until_ready(loss)
    ref = _reference(logits, target, weights, alpha=1.0, gamma=2.0, eps=1e-6)
    assert loss.shape == (B, 1, A)
    assert jnp.allclose(loss, ref, atol=1e-5, rtol=1e-5)

    # --- Test 2: anchor count not divisible by the tile (exercises the partial edge
    #     block + in-kernel tail mask), alpha != 1.
    B2, C2, A2 = 2, 5, 300
    k4, k5, k6 = jax.random.split(key, 3)
    logits2 = jax.random.normal(k4, (B2, C2, A2), dtype=jnp.float32)
    cls_idx2 = jax.random.randint(k5, (B2, A2), 0, C2)
    target2 = jnp.transpose(jax.nn.one_hot(cls_idx2, C2, dtype=jnp.float32), (0, 2, 1))
    weights2 = jax.random.uniform(k6, (B2, A2), dtype=jnp.float32)

    loss2 = softmax_focal_classification_loss(logits2, target2, weights2,
                                              alpha=0.5, gamma=2.0, eps=1e-6,
                                              anchor_tile=128)
    jax.block_until_ready(loss2)
    ref2 = _reference(logits2, target2, weights2, alpha=0.5, gamma=2.0, eps=1e-6)
    assert loss2.shape == (B2, 1, A2)
    assert jnp.allclose(loss2, ref2, atol=1e-5, rtol=1e-5)

    print("KERNEL_OK")
</pallas_src>

<mosaic_0001>
module attributes {stable_mosaic.version = 11 : i64} {
  func.func @_focal_kernel(%arg0: i32, %arg1: memref<2x8x16xf32, #tpu.memory_space<vmem>>, %arg2: memref<2x8x16xf32, #tpu.memory_space<vmem>>, %arg3: memref<2x1x16xf32, #tpu.memory_space<vmem>>, %arg4: memref<2x1x16xf32, #tpu.memory_space<vmem>>) attributes {dimension_semantics = [#tpu.dimension_semantics<parallel>], iteration_bounds = array<i64: 1>, scalar_prefetch = 0 : i64, scratch_operands = 0 : i64, tpu.core_type = #tpu.core_type<tc>, window_params = [{transform_indices = @transform_0, window_bounds = array<i64: 2, 8, 16>}, {transform_indices = @transform_1, window_bounds = array<i64: 2, 8, 16>}, {transform_indices = @transform_2, window_bounds = array<i64: 2, 1, 16>}, {transform_indices = @transform_3, window_bounds = array<i64: 2, 1, 16>}]} {
    %c0 = arith.constant 0 : index
    %c0_0 = arith.constant 0 : index
    %c0_1 = arith.constant 0 : index
    %0 = vector.load %arg1[%c0, %c0_0, %c0_1] : memref<2x8x16xf32, #tpu.memory_space<vmem>>, vector<2x8x16xf32>
    %c0_2 = arith.constant 0 : index
    %c0_3 = arith.constant 0 : index
    %c0_4 = arith.constant 0 : index
    %1 = vector.load %arg2[%c0_2, %c0_3, %c0_4] : memref<2x8x16xf32, #tpu.memory_space<vmem>>, vector<2x8x16xf32>
    %c0_5 = arith.constant 0 : index
    %c0_6 = arith.constant 0 : index
    %c0_7 = arith.constant 0 : index
    %2 = vector.load %arg3[%c0_5, %c0_6, %c0_7] : memref<2x1x16xf32, #tpu.memory_space<vmem>>, vector<2x1x16xf32>
    %cst = arith.constant dense<0xFF800000> : vector<2x16xf32>
    %3 = vector.multi_reduction <maximumf>, %0, %cst [1] : vector<2x8x16xf32> to vector<2x16xf32>
    %4 = vector.shape_cast %3 : vector<2x16xf32> to vector<2x1x16xf32>
    %5 = vector.broadcast %4 : vector<2x1x16xf32> to vector<2x8x16xf32>
    %6 = arith.subf %0, %5 : vector<2x8x16xf32>
    %7 = math.exp %6 : vector<2x8x16xf32>
    %cst_8 = arith.constant dense<0.000000e+00> : vector<2x16xf32>
    %8 = vector.multi_reduction <add>, %7, %cst_8 [1] : vector<2x8x16xf32> to vector<2x16xf32>
    %9 = vector.shape_cast %8 : vector<2x16xf32> to vector<2x1x16xf32>
    %cst_9 = arith.constant 1.000000e+00 : f32
    %10 = vector.broadcast %cst_9 : f32 to vector<2x1x16xf32>
    %11 = arith.divf %10, %9 : vector<2x1x16xf32>
    %12 = vector.broadcast %11 : vector<2x1x16xf32> to vector<2x8x16xf32>
    %13 = arith.mulf %7, %12 : vector<2x8x16xf32>
    %cst_10 = arith.constant 9.99999997E-7 : f32
    %14 = vector.broadcast %cst_10 : f32 to vector<2x8x16xf32>
    %15 = arith.addf %13, %14 : vector<2x8x16xf32>
    %cst_11 = arith.constant 1.000000e+00 : f32
    %16 = vector.broadcast %cst_11 : f32 to vector<2x8x16xf32>
    %17 = arith.subf %16, %15 : vector<2x8x16xf32>
    %18 = arith.mulf %17, %17 : vector<2x8x16xf32>
    %19 = math.log %15 : vector<2x8x16xf32>
    %cst_12 = arith.constant -1.000000e+00 : f32
    %20 = vector.broadcast %cst_12 : f32 to vector<2x8x16xf32>
    %21 = arith.mulf %20, %18 : vector<2x8x16xf32>
    %22 = arith.mulf %21, %19 : vector<2x8x16xf32>
    %23 = arith.mulf %1, %22 : vector<2x8x16xf32>
    %cst_13 = arith.constant dense<0.000000e+00> : vector<2x16xf32>
    %24 = vector.multi_reduction <add>, %23, %cst_13 [1] : vector<2x8x16xf32> to vector<2x16xf32>
    %25 = vector.shape_cast %24 : vector<2x16xf32> to vector<2x1x16xf32>
    %26 = arith.mulf %25, %2 : vector<2x1x16xf32>
    %c0_14 = arith.constant 0 : index
    %c0_15 = arith.constant 0 : index
    %c0_16 = arith.constant 0 : index
    %27 = vector.load %arg4[%c0_14, %c0_15, %c0_16] : memref<2x1x16xf32, #tpu.memory_space<vmem>>, vector<2x1x16xf32>
    tpu.vector_store %arg4[%c0_14, %c0_15, %c0_16], %26 {strides = array<i32>} : memref<2x1x16xf32, #tpu.memory_space<vmem>>, vector<2x1x16xf32>,
    return
  }
  func.func @transform_0(%arg0: i32) -> (i32, i32, i32) {
    %c0_i32 = arith.constant 0 : i32
    %c0_i32_0 = arith.constant 0 : i32
    %c0_i32_1 = arith.constant 0 : i32
    return %c0_i32, %c0_i32_0, %arg0 : i32, i32, i32
  }
  func.func @transform_1(%arg0: i32) -> (i32, i32, i32) {
    %c0_i32 = arith.constant 0 : i32
    %c0_i32_0 = arith.constant 0 : i32
    %c0_i32_1 = arith.constant 0 : i32
    return %c0_i32, %c0_i32_0, %arg0 : i32, i32, i32
  }
  func.func @transform_2(%arg0: i32) -> (i32, i32, i32) {
    %c0_i32 = arith.constant 0 : i32
    %c0_i32_0 = arith.constant 0 : i32
    %c0_i32_1 = arith.constant 0 : i32
    return %c0_i32, %c0_i32_0, %arg0 : i32, i32, i32
  }
  func.func @transform_3(%arg0: i32) -> (i32, i32, i32) {
    %c0_i32 = arith.constant 0 : i32
    %c0_i32_0 = arith.constant 0 : i32
    %c0_i32_1 = arith.constant 0 : i32
    return %c0_i32, %c0_i32_0, %arg0 : i32, i32, i32
  }
}

</mosaic_0001>

<bundles_post_ra>
// kernel: tpu_custom_call.1
= control target key start
LH: loop header
LB: loop body
LE: loop exit
PB: predicated region body
PF: predicated region fallthrough
CT: control target
= control target key end

     0   :  { %8 = vsyncpa [#allocation3], 0  ;;  %s276_s0 = inlined_call_operand.hbm [shape: f32[2,8,16], index: 0, kind: input, shape index: {}]   ;;  %s277_s1 = inlined_call_operand.hbm [shape: f32[2,8,16], index: 1, kind: input, shape index: {}]   ;;  %s278_s2 = inlined_call_operand.vmem [shape: f32[2,1,16], index: 2, kind: input, shape index: {}]   ;;  %s279_s3 = inlined_call_operand.hbm [shape: f32[2,1,16], index: 3, kind: output, shape index: {}]  }
   0x1   :  { %9 = vsyncpa [#allocation6], 0 }
   0x2   :  { %10 = vsyncpa [#allocation4], 0  ;;  %s228_s12 = smov [#allocation2]  }
   0x3   :  { %s16_s13 = sshll.u32 %s228_s12, 4  ;;  %s17_s13 = int_to_ptr.vmem [resolvable:$true] %s16_s13 }
   0x4   :  { %s170_s14 = scalar_lea.vmem %s17_s13, 256  ;;  %p175_p1 = scmp.lt.s32.totalorder %s17_s13, %s17_s13 }
   0x5   :  { %p171_p0 = scmp.ne.s32.totalorder %s17_s13, %s170_s14  ;;  %p176_p2 = scmp.lt.s32.totalorder %s170_s14, %s170_s14 }
   0x7   :  { %p177_p3 = por %p176_p2, %p175_p1 }
   0x9   :  { %p178_p4 = pnand %p177_p3, %p171_p0 }
   0xb   :  { %181 = shalt.err (!%p178_p4)
}
   0xc   :  { %s229_s15 = smov 128   ;;  %s230_s16 = smov 8  }
   0xd   :  { %22 = dma.hbm_to_vmem [thread:$0]  %s276_s0, 256, %s17_s13, [#allocation3], %s229_s15, %s229_s15, %s230_s16  }
   0xe   :  { %s231_s19 = smov [#allocation5]  }
   0xf   :  { %s28_s20 = sshll.u32 %s231_s19, 4  ;;  %s29_s20 = int_to_ptr.vmem [resolvable:$true] %s28_s20 }
  0x10   :  { %s190_s21 = scalar_lea.vmem %s29_s20, 256  ;;  %p195_p6 = scmp.lt.s32.totalorder %s29_s20, %s29_s20 }
  0x11   :  { %p191_p5 = scmp.ne.s32.totalorder %s29_s20, %s190_s21  ;;  %p196_p7 = scmp.lt.s32.totalorder %s190_s21, %s190_s21 }
  0x13   :  { %p197_p8 = por %p196_p7, %p195_p6 }
  0x15   :  { %p198_p9 = pnand %p197_p8, %p191_p5 }
  0x17   :  { %201 = shalt.err (!%p198_p9)
}
  0x18   :  { %34 = dma.hbm_to_vmem [thread:$0]  %s277_s1, 256, %s29_s20, [#allocation6], %s229_s15, %s229_s15, %s230_s16  }
  0x19   :  { %222 = dma.done.wait [#allocation3], 256  }
  0x1a   :  { %223 = vsyncadd [#allocation3], 4294967040 }
  0x1b   :  { %224 = dma.done.wait [#allocation6], 256  }
  0x1c   :  { %225 = vsyncadd [#allocation6], 4294967040  ;;  %vm49_vm0 = vcmask 130048   ;;  %v43_v0 = vld [vmem:[#allocation2] sm:$0xff]  ;;  %v44_v1 = vld [vmem:[#allocation2 + $0x8] sm:$0xff]  ;;  %s232_s26 = smov [#allocation7]  }
  0x1d   :  { %v50_v2 = vsel %vm49_vm0, %v43_v0, -inf  ;;  %v57_v3 = vsel %vm49_vm0, %v44_v1, -inf  ;;  %v45_v51 = vld [vmem:[#allocation5] sm:$0xff]  ;;  %v46_v54 = vld [vmem:[#allocation5 + $0x8] sm:$0xff]  ;;  %s130_s27 = sshll.u32 %s232_s26, 4  ;;  %vm122_vm1 = vcmask 122880   ;;  %s131_s27 = int_to_ptr.vmem [resolvable:$true] %s130_s27 }
  0x1e   :  { %v51_v4 = vrot.slane %v50_v2, 4  ;;  %v58_v5 = vrot.slane %v57_v3, 4  ;;  %s202_s28 = scalar_lea.vmem %s131_s27, 32  ;;  %p207_p11 = scmp.lt.s32.totalorder %s131_s27, %s131_s27 }
  0x1f   :  { %p203_p10 = scmp.ne.s32.totalorder %s131_s27, %s202_s28  ;;  %p208_p12 = scmp.lt.s32.totalorder %s202_s28, %s202_s28 }
  0x20   :  { %v52_v6 = vmax.f32 %v50_v2, %v51_v4  ;;  %v59_v7 = vmax.f32 %v57_v3, %v58_v5  ;;  %v47_v5 = vld [vmem:[%s278_s2] sm:$0x1] }
  0x21   :  { %p209_p13 = por %p208_p12, %p207_p11 }
  0x22   :  { %v53_v8 = vrot.slane %v52_v6, 2  ;;  %v60_v9 = vrot.slane %v59_v7, 2 }
  0x23   :  { %p210_p0 = pnand %p209_p13, %p203_p10 }
  0x24   :  { %v54_v10 = vmax.f32 %v52_v6, %v53_v8  ;;  %v61_v11 = vmax.f32 %v59_v7, %v60_v9  ;;  %v48_v8 = vld [vmem:[%s278_s2 + $0x1] sm:$0x1] }
  0x26   :  { %v55_v12 = vrot.slane %v54_v10, 1  ;;  %v62_v13 = vrot.slane %v61_v11, 1 }
  0x28   :  { %v56_v14 = vmax.f32 %v54_v10, %v55_v12  ;;  %v63_v15 = vmax.f32 %v61_v11, %v62_v13 }
  0x2a   :  { %v64_v16 = vsub.f32 %v43_v0, %v56_v14  ;;  %v65_v17 = vsub.f32 %v44_v1, %v63_v15 }
  0x2c   :  { %v66_v18 = vmul.f32 1.442695, %v64_v16  ;;  %v68_v19 = vmul.f32 1.442695, %v65_v17 }
  0x2e   :  { %150 = vpow2.f32 %v66_v18 }
  0x2f   :  { %152 = vpow2.f32 %v68_v19 }
  0x3b   :  { %v151_v20 = vpop.eup %150 }
  0x3c   :  { %v153_v21 = vpop.eup %152  ;;  %v70_v22 = vsel %vm49_vm0, %v151_v20, 0.0 }
  0x3d   :  { %v71_v23 = vrot.slane %v70_v22, 4  ;;  %v77_v24 = vsel %vm49_vm0, %v153_v21, 0.0 }
  0x3e   :  { %v78_v25 = vrot.slane %v77_v24, 4 }
  0x3f   :  { %v72_v26 = vadd.f32 %v71_v23, %v70_v22 }
  0x40   :  { %v79_v27 = vadd.f32 %v78_v25, %v77_v24 }
  0x41   :  { %v73_v28 = vrot.slane %v72_v26, 2 }
  0x42   :  { %v80_v29 = vrot.slane %v79_v27, 2 }
  0x43   :  { %v74_v30 = vadd.f32 %v73_v28, %v72_v26 }
  0x44   :  { %v81_v31 = vadd.f32 %v80_v29, %v79_v27 }
  0x45   :  { %v75_v32 = vrot.slane %v74_v30, 1 }
  0x46   :  { %v82_v33 = vrot.slane %v81_v31, 1 }
  0x47   :  { %v76_v34 = vadd.f32 %v75_v32, %v74_v30 }
  0x48   :  { %v83_v35 = vadd.f32 %v82_v33, %v81_v31 }
  0x49   :  { %154 = vrcp.f32 %v76_v34 }
  0x4a   :  { %156 = vrcp.f32 %v83_v35 }
  0x56   :  { %v155_v36 = vpop.eup %154 }
  0x57   :  { %v157_v37 = vpop.eup %156  ;;  %v88_v38 = vmul.f32 %v155_v36, %v151_v20 }
  0x58   :  { %v89_v39 = vmul.f32 %v157_v37, %v153_v21 }
  0x59   :  { %v90_v40 = vadd.f32 1e-06, %v88_v38 }
  0x5a   :  { %v91_v41 = vadd.f32 1e-06, %v89_v39 }
  0x5b   :  { %158 = vlog2.f32 %v90_v40  ;;  %v92_v42 = vsub.f32 1.0, %v90_v40 }
  0x5c   :  { %160 = vlog2.f32 %v91_v41  ;;  %v93_v43 = vsub.f32 1.0, %v91_v41 }
  0x5d   :  { %v94_v44 = vmul.f32 %v92_v42, %v92_v42 }
  0x5e   :  { %v95_v45 = vmul.f32 %v93_v43, %v93_v43 }
  0x5f   :  { %v100_v46 = vmul.f32 -1.0, %v94_v44 }
  0x60   :  { %v101_v48 = vmul.f32 -1.0, %v95_v45 }
  0x68   :  { %v159_v47 = vpop.eup %158 }
  0x69   :  { %v161_v49 = vpop.eup %160  ;;  %v97_v50 = vmul.f32 0.6931472, %v159_v47 }
  0x6a   :  { %v99_v52 = vmul.f32 0.6931472, %v161_v49 }
  0x6b   :  { %v102_v53 = vmul.f32 %v100_v46, %v97_v50 }
  0x6c   :  { %v103_v55 = vmul.f32 %v101_v48, %v99_v52 }
  0x6d   :  { %v104_v56 = vmul.f32 %v102_v53, %v45_v51 }
  0x6e   :  { %v105_v57 = vmul.f32 %v103_v55, %v46_v54 }
  0x6f   :  { %v106_v58 = vsel %vm49_vm0, %v104_v56, 0.0 }
  0x70   :  { %v107_v59 = vrot.slane %v106_v58, 4  ;;  %v113_v60 = vsel %vm49_vm0, %v105_v57, 0.0 }
  0x71   :  { %v114_v61 = vrot.slane %v113_v60, 4 }
  0x72   :  { %v108_v62 = vadd.f32 %v107_v59, %v106_v58 }
  0x73   :  { %v115_v63 = vadd.f32 %v114_v61, %v113_v60 }
  0x74   :  { %v109_v0 = vrot.slane %v108_v62, 2 }
  0x75   :  { %v116_v1 = vrot.slane %v115_v63, 2 }
  0x76   :  { %v110_v2 = vadd.f32 %v109_v0, %v108_v62 }
  0x77   :  { %v117_v3 = vadd.f32 %v116_v1, %v115_v63 }
  0x78   :  { %v111_v4 = vrot.slane %v110_v2, 1 }
  0x79   :  { %v118_v6 = vrot.slane %v117_v3, 1 }
  0x7a   :  { %v112_v7 = vadd.f32 %v111_v4, %v110_v2 }
  0x7b   :  { %v119_v9 = vadd.f32 %v118_v6, %v117_v3 }
  0x7c   :  { %v120_v10 = vmul.f32 %v112_v7, %v47_v5 }
  0x7d   :  { %v121_v11 = vmul.f32 %v119_v9, %v48_v8 }
  0x7e   :  { %123 = vst.msk [vmem:[#allocation7] sm:$0x1] %vm122_vm1, %v120_v10 }
  0x7f   :  { %124 = vst.msk [vmem:[#allocation7 + $0x1] sm:$0x1] %vm122_vm1, %v121_v11 }
  0x80   :  { %213 = shalt.err (!%p210_p0)
}
  0x81   :  { %s233_s29 = smov 16   ;;  %s234_s30 = smov 1  }
  0x82   :  { %136 = dma.vmem_to_hbm [thread:$0]  %s131_s27, 32, %s279_s3, [#allocation4], %s233_s29, %s233_s29, %s234_s30  }
  0x83   :  { %226 = dma.done.wait [#allocation4], 32  }
  0x84   :  { %227 = vsyncadd [#allocation4], 4294967264 }
  0x85   :  { %140 = vsyncpa [#allocation3], 1 }
  0x86   :  { %141 = vsyncpa [#allocation6], 1 }
  0x87   :  { %142 = vsyncpa [#allocation4], 1 }

</bundles_post_ra>
